<compile_context>
chip_gen: v7x
topology: tpu7x:2x2x1
jax: 0.10.0
libtpu: 0.0.40
codegen_flags: <defaults>
</compile_context>

<pallas_src>
import jax
import jax.numpy as jnp
from jax.experimental import pallas as pl
from jax.experimental.pallas import tpu as pltpu

LANES = 128


def mlp_kernel(w1_ref, b1_ref, w2_ref, b2_ref, x_ref, o_ref):
    # x_ref / o_ref: (tile_rows, 128) f32 in VMEM (batch spread over sublanes+lanes)
    # w1_ref, b1_ref, w2_ref: (HID,) f32 in SMEM; b2_ref: (1,) f32 in SMEM
    x = x_ref[...]
    hid = w1_ref.shape[0]
    acc = jnp.zeros_like(x)
    for j in range(hid):                       # static unroll: 20 scalar-broadcast FMAs on the VPU
        h = jnp.maximum(x * w1_ref[j] + b1_ref[j], 0.0)
        acc = acc + h * w2_ref[j]
    o_ref[...] = acc + b2_ref[0]


def net_forward(x, w1, b1, w2, b2, *, max_tile_rows=512):
    """x: (N, 1) f32.  w1, b1, w2: (HID,) f32.  b2: (1,) f32.  Returns (N, 1) f32."""
    n = x.shape[0]
    x_flat = x.reshape(-1).astype(jnp.float32)

    # Lane-dense slab: batch on the lane axis; pad rows to the 8-sublane tile
    # and (if tiling) to a multiple of the row tile.
    rows = pl.cdiv(n, LANES)
    rows = ((rows + 7) // 8) * 8
    tile_rows = rows if rows <= max_tile_rows else max_tile_rows
    rows = ((rows + tile_rows - 1) // tile_rows) * tile_rows
    n_pad = rows * LANES

    x2d = jnp.zeros((n_pad,), jnp.float32).at[:n].set(x_flat).reshape(rows, LANES)

    grid = (rows // tile_rows,)
    out2d = pl.pallas_call(
        mlp_kernel,
        out_shape=jax.ShapeDtypeStruct((rows, LANES), jnp.float32),
        grid_spec=pltpu.PrefetchScalarGridSpec(
            num_scalar_prefetch=0,
            grid=grid,
            in_specs=[
                pl.BlockSpec(memory_space=pltpu.MemorySpace.SMEM),   # w1 (HID,)
                pl.BlockSpec(memory_space=pltpu.MemorySpace.SMEM),   # b1 (HID,)
                pl.BlockSpec(memory_space=pltpu.MemorySpace.SMEM),   # w2 (HID,)
                pl.BlockSpec(memory_space=pltpu.MemorySpace.SMEM),   # b2 (1,)
                pl.BlockSpec((tile_rows, LANES), lambda i: (i, 0)),  # x slab tile
            ],
            out_specs=pl.BlockSpec((tile_rows, LANES), lambda i: (i, 0)),
        ),
        compiler_params=pltpu.CompilerParams(
            dimension_semantics=("parallel",),
        ),
    )(w1, b1, w2, b2, x2d)

    return out2d.reshape(-1)[:n].reshape(n, 1)


def reference_forward(x, w1, b1, w2, b2):
    h = jnp.maximum(x * w1[None, :] + b1[None, :], 0.0)   # (N, HID)
    return h @ w2[:, None] + b2[None, :]                   # (N, 1)


if __name__ == "__main__":
    key = jax.random.PRNGKey(0)
    k_w1, k_b1, k_w2, k_b2 = jax.random.split(key, 4)

    N, IN, HID, OUT = 1000, 1, 20, 1

    # Same data as the PyTorch spec: 1000 points in [-1, 1], shape (N, 1).
    x = jnp.linspace(-1.0, 1.0, N, dtype=jnp.float32).reshape(N, IN)

    # PyTorch-style uniform(-1/sqrt(fan_in), 1/sqrt(fan_in)) init, stored flat:
    #   w1 = hidden.weight (20,1) flattened, b1 = hidden.bias (20,)
    #   w2 = predict.weight (1,20) flattened, b2 = predict.bias (1,)
    lim1 = 1.0 / jnp.sqrt(jnp.float32(IN))
    w1 = jax.random.uniform(k_w1, (HID,), jnp.float32, -lim1, lim1)
    b1 = jax.random.uniform(k_b1, (HID,), jnp.float32, -lim1, lim1)
    lim2 = 1.0 / jnp.sqrt(jnp.float32(HID))
    w2 = jax.random.uniform(k_w2, (HID,), jnp.float32, -lim2, lim2)
    b2 = jax.random.uniform(k_b2, (OUT,), jnp.float32, -lim2, lim2)

    y = net_forward(x, w1, b1, w2, b2)
    y = jax.block_until_ready(y)

    y_ref = reference_forward(x, w1, b1, w2, b2)
    assert y.shape == (N, OUT)
    assert jnp.allclose(y, y_ref, atol=1e-5, rtol=1e-5), "mismatch vs reference"

    print("KERNEL_OK")
</pallas_src>

<mosaic_0001>
module attributes {stable_mosaic.version = 11 : i64} {
  func.func @mlp_kernel(%arg0: i32, %arg1: memref<20xf32, #tpu.memory_space<smem>>, %arg2: memref<20xf32, #tpu.memory_space<smem>>, %arg3: memref<20xf32, #tpu.memory_space<smem>>, %arg4: memref<1xf32, #tpu.memory_space<smem>>, %arg5: memref<8x128xf32, #tpu.memory_space<vmem>>, %arg6: memref<8x128xf32, #tpu.memory_space<vmem>>) attributes {dimension_semantics = [#tpu.dimension_semantics<parallel>], iteration_bounds = array<i64: 1>, scalar_prefetch = 0 : i64, scratch_operands = 0 : i64, tpu.core_type = #tpu.core_type<tc>, window_params = [{transform_indices = @transform_0, window_bounds = array<i64: 20>}, {transform_indices = @transform_1, window_bounds = array<i64: 20>}, {transform_indices = @transform_2, window_bounds = array<i64: 20>}, {transform_indices = @transform_3, window_bounds = array<i64: 1>}, {transform_indices = @transform_4, window_bounds = array<i64: 8, 128>}, {transform_indices = @transform_5, window_bounds = array<i64: 8, 128>}]} {
    %c0 = arith.constant 0 : index
    %c0_0 = arith.constant 0 : index
    %0 = vector.load %arg5[%c0, %c0_0] : memref<8x128xf32, #tpu.memory_space<vmem>>, vector<8x128xf32>
    %cst = arith.constant 0.000000e+00 : f32
    %1 = vector.broadcast %cst : f32 to vector<8x128xf32>
    %c0_1 = arith.constant 0 : index
    %2 = memref.load %arg1[%c0_1] : memref<20xf32, #tpu.memory_space<smem>>
    %3 = vector.broadcast %2 : f32 to vector<8x128xf32>
    %4 = arith.mulf %0, %3 : vector<8x128xf32>
    %c0_2 = arith.constant 0 : index
    %5 = memref.load %arg2[%c0_2] : memref<20xf32, #tpu.memory_space<smem>>
    %6 = vector.broadcast %5 : f32 to vector<8x128xf32>
    %7 = arith.addf %4, %6 : vector<8x128xf32>
    %cst_3 = arith.constant 0.000000e+00 : f32
    %8 = vector.broadcast %cst_3 : f32 to vector<8x128xf32>
    %9 = arith.maximumf %7, %8 : vector<8x128xf32>
    %c0_4 = arith.constant 0 : index
    %10 = memref.load %arg3[%c0_4] : memref<20xf32, #tpu.memory_space<smem>>
    %11 = vector.broadcast %10 : f32 to vector<8x128xf32>
    %12 = arith.mulf %9, %11 : vector<8x128xf32>
    %13 = arith.addf %1, %12 : vector<8x128xf32>
    %c1 = arith.constant 1 : index
    %14 = memref.load %arg1[%c1] : memref<20xf32, #tpu.memory_space<smem>>
    %15 = vector.broadcast %14 : f32 to vector<8x128xf32>
    %16 = arith.mulf %0, %15 : vector<8x128xf32>
    %c1_5 = arith.constant 1 : index
    %17 = memref.load %arg2[%c1_5] : memref<20xf32, #tpu.memory_space<smem>>
    %18 = vector.broadcast %17 : f32 to vector<8x128xf32>
    %19 = arith.addf %16, %18 : vector<8x128xf32>
    %cst_6 = arith.constant 0.000000e+00 : f32
    %20 = vector.broadcast %cst_6 : f32 to vector<8x128xf32>
    %21 = arith.maximumf %19, %20 : vector<8x128xf32>
    %c1_7 = arith.constant 1 : index
    %22 = memref.load %arg3[%c1_7] : memref<20xf32, #tpu.memory_space<smem>>
    %23 = vector.broadcast %22 : f32 to vector<8x128xf32>
    %24 = arith.mulf %21, %23 : vector<8x128xf32>
    %25 = arith.addf %13, %24 : vector<8x128xf32>
    %c2 = arith.constant 2 : index
    %26 = memref.load %arg1[%c2] : memref<20xf32, #tpu.memory_space<smem>>
    %27 = vector.broadcast %26 : f32 to vector<8x128xf32>
    %28 = arith.mulf %0, %27 : vector<8x128xf32>
    %c2_8 = arith.constant 2 : index
    %29 = memref.load %arg2[%c2_8] : memref<20xf32, #tpu.memory_space<smem>>
    %30 = vector.broadcast %29 : f32 to vector<8x128xf32>
    %31 = arith.addf %28, %30 : vector<8x128xf32>
    %cst_9 = arith.constant 0.000000e+00 : f32
    %32 = vector.broadcast %cst_9 : f32 to vector<8x128xf32>
    %33 = arith.maximumf %31, %32 : vector<8x128xf32>
    %c2_10 = arith.constant 2 : index
    %34 = memref.load %arg3[%c2_10] : memref<20xf32, #tpu.memory_space<smem>>
    %35 = vector.broadcast %34 : f32 to vector<8x128xf32>
    %36 = arith.mulf %33, %35 : vector<8x128xf32>
    %37 = arith.addf %25, %36 : vector<8x128xf32>
    %c3 = arith.constant 3 : index
    %38 = memref.load %arg1[%c3] : memref<20xf32, #tpu.memory_space<smem>>
    %39 = vector.broadcast %38 : f32 to vector<8x128xf32>
    %40 = arith.mulf %0, %39 : vector<8x128xf32>
    %c3_11 = arith.constant 3 : index
    %41 = memref.load %arg2[%c3_11] : memref<20xf32, #tpu.memory_space<smem>>
    %42 = vector.broadcast %41 : f32 to vector<8x128xf32>
    %43 = arith.addf %40, %42 : vector<8x128xf32>
    %cst_12 = arith.constant 0.000000e+00 : f32
    %44 = vector.broadcast %cst_12 : f32 to vector<8x128xf32>
    %45 = arith.maximumf %43, %44 : vector<8x128xf32>
    %c3_13 = arith.constant 3 : index
    %46 = memref.load %arg3[%c3_13] : memref<20xf32, #tpu.memory_space<smem>>
    %47 = vector.broadcast %46 : f32 to vector<8x128xf32>
    %48 = arith.mulf %45, %47 : vector<8x128xf32>
    %49 = arith.addf %37, %48 : vector<8x128xf32>
    %c4 = arith.constant 4 : index
    %50 = memref.load %arg1[%c4] : memref<20xf32, #tpu.memory_space<smem>>
    %51 = vector.broadcast %50 : f32 to vector<8x128xf32>
    %52 = arith.mulf %0, %51 : vector<8x128xf32>
    %c4_14 = arith.constant 4 : index
    %53 = memref.load %arg2[%c4_14] : memref<20xf32, #tpu.memory_space<smem>>
    %54 = vector.broadcast %53 : f32 to vector<8x128xf32>
    %55 = arith.addf %52, %54 : vector<8x128xf32>
    %cst_15 = arith.constant 0.000000e+00 : f32
    %56 = vector.broadcast %cst_15 : f32 to vector<8x128xf32>
    %57 = arith.maximumf %55, %56 : vector<8x128xf32>
    %c4_16 = arith.constant 4 : index
    %58 = memref.load %arg3[%c4_16] : memref<20xf32, #tpu.memory_space<smem>>
    %59 = vector.broadcast %58 : f32 to vector<8x128xf32>
    %60 = arith.mulf %57, %59 : vector<8x128xf32>
    %61 = arith.addf %49, %60 : vector<8x128xf32>
    %c5 = arith.constant 5 : index
    %62 = memref.load %arg1[%c5] : memref<20xf32, #tpu.memory_space<smem>>
    %63 = vector.broadcast %62 : f32 to vector<8x128xf32>
    %64 = arith.mulf %0, %63 : vector<8x128xf32>
    %c5_17 = arith.constant 5 : index
    %65 = memref.load %arg2[%c5_17] : memref<20xf32, #tpu.memory_space<smem>>
    %66 = vector.broadcast %65 : f32 to vector<8x128xf32>
    %67 = arith.addf %64, %66 : vector<8x128xf32>
    %cst_18 = arith.constant 0.000000e+00 : f32
    %68 = vector.broadcast %cst_18 : f32 to vector<8x128xf32>
    %69 = arith.maximumf %67, %68 : vector<8x128xf32>
    %c5_19 = arith.constant 5 : index
    %70 = memref.load %arg3[%c5_19] : memref<20xf32, #tpu.memory_space<smem>>
    %71 = vector.broadcast %70 : f32 to vector<8x128xf32>
    %72 = arith.mulf %69, %71 : vector<8x128xf32>
    %73 = arith.addf %61, %72 : vector<8x128xf32>
    %c6 = arith.constant 6 : index
    %74 = memref.load %arg1[%c6] : memref<20xf32, #tpu.memory_space<smem>>
    %75 = vector.broadcast %74 : f32 to vector<8x128xf32>
    %76 = arith.mulf %0, %75 : vector<8x128xf32>
    %c6_20 = arith.constant 6 : index
    %77 = memref.load %arg2[%c6_20] : memref<20xf32, #tpu.memory_space<smem>>
    %78 = vector.broadcast %77 : f32 to vector<8x128xf32>
    %79 = arith.addf %76, %78 : vector<8x128xf32>
    %cst_21 = arith.constant 0.000000e+00 : f32
    %80 = vector.broadcast %cst_21 : f32 to vector<8x128xf32>
    %81 = arith.maximumf %79, %80 : vector<8x128xf32>
    %c6_22 = arith.constant 6 : index
    %82 = memref.load %arg3[%c6_22] : memref<20xf32, #tpu.memory_space<smem>>
    %83 = vector.broadcast %82 : f32 to vector<8x128xf32>
    %84 = arith.mulf %81, %83 : vector<8x128xf32>
    %85 = arith.addf %73, %84 : vector<8x128xf32>
    %c7 = arith.constant 7 : index
    %86 = memref.load %arg1[%c7] : memref<20xf32, #tpu.memory_space<smem>>
    %87 = vector.broadcast %86 : f32 to vector<8x128xf32>
    %88 = arith.mulf %0, %87 : vector<8x128xf32>
    %c7_23 = arith.constant 7 : index
    %89 = memref.load %arg2[%c7_23] : memref<20xf32, #tpu.memory_space<smem>>
    %90 = vector.broadcast %89 : f32 to vector<8x128xf32>
    %91 = arith.addf %88, %90 : vector<8x128xf32>
    %cst_24 = arith.constant 0.000000e+00 : f32
    %92 = vector.broadcast %cst_24 : f32 to vector<8x128xf32>
    %93 = arith.maximumf %91, %92 : vector<8x128xf32>
    %c7_25 = arith.constant 7 : index
    %94 = memref.load %arg3[%c7_25] : memref<20xf32, #tpu.memory_space<smem>>
    %95 = vector.broadcast %94 : f32 to vector<8x128xf32>
    %96 = arith.mulf %93, %95 : vector<8x128xf32>
    %97 = arith.addf %85, %96 : vector<8x128xf32>
    %c8 = arith.constant 8 : index
    %98 = memref.load %arg1[%c8] : memref<20xf32, #tpu.memory_space<smem>>
    %99 = vector.broadcast %98 : f32 to vector<8x128xf32>
    %100 = arith.mulf %0, %99 : vector<8x128xf32>
    %c8_26 = arith.constant 8 : index
    %101 = memref.load %arg2[%c8_26] : memref<20xf32, #tpu.memory_space<smem>>
    %102 = vector.broadcast %101 : f32 to vector<8x128xf32>
    %103 = arith.addf %100, %102 : vector<8x128xf32>
    %cst_27 = arith.constant 0.000000e+00 : f32
    %104 = vector.broadcast %cst_27 : f32 to vector<8x128xf32>
    %105 = arith.maximumf %103, %104 : vector<8x128xf32>
    %c8_28 = arith.constant 8 : index
    %106 = memref.load %arg3[%c8_28] : memref<20xf32, #tpu.memory_space<smem>>
    %107 = vector.broadcast %106 : f32 to vector<8x128xf32>
    %108 = arith.mulf %105, %107 : vector<8x128xf32>
    %109 = arith.addf %97, %108 : vector<8x128xf32>
    %c9 = arith.constant 9 : index
    %110 = memref.load %arg1[%c9] : memref<20xf32, #tpu.memory_space<smem>>
    %111 = vector.broadcast %110 : f32 to vector<8x128xf32>
    %112 = arith.mulf %0, %111 : vector<8x128xf32>
    %c9_29 = arith.constant 9 : index
    %113 = memref.load %arg2[%c9_29] : memref<20xf32, #tpu.memory_space<smem>>
    %114 = vector.broadcast %113 : f32 to vector<8x128xf32>
    %115 = arith.addf %112, %114 : vector<8x128xf32>
    %cst_30 = arith.constant 0.000000e+00 : f32
    %116 = vector.broadcast %cst_30 : f32 to vector<8x128xf32>
    %117 = arith.maximumf %115, %116 : vector<8x128xf32>
    %c9_31 = arith.constant 9 : index
    %118 = memref.load %arg3[%c9_31] : memref<20xf32, #tpu.memory_space<smem>>
    %119 = vector.broadcast %118 : f32 to vector<8x128xf32>
    %120 = arith.mulf %117, %119 : vector<8x128xf32>
    %121 = arith.addf %109, %120 : vector<8x128xf32>
    %c10 = arith.constant 10 : index
    %122 = memref.load %arg1[%c10] : memref<20xf32, #tpu.memory_space<smem>>
    %123 = vector.broadcast %122 : f32 to vector<8x128xf32>
    %124 = arith.mulf %0, %123 : vector<8x128xf32>
    %c10_32 = arith.constant 10 : index
    %125 = memref.load %arg2[%c10_32] : memref<20xf32, #tpu.memory_space<smem>>
    %126 = vector.broadcast %125 : f32 to vector<8x128xf32>
    %127 = arith.addf %124, %126 : vector<8x128xf32>
    %cst_33 = arith.constant 0.000000e+00 : f32
    %128 = vector.broadcast %cst_33 : f32 to vector<8x128xf32>
    %129 = arith.maximumf %127, %128 : vector<8x128xf32>
    %c10_34 = arith.constant 10 : index
    %130 = memref.load %arg3[%c10_34] : memref<20xf32, #tpu.memory_space<smem>>
    %131 = vector.broadcast %130 : f32 to vector<8x128xf32>
    %132 = arith.mulf %129, %131 : vector<8x128xf32>
    %133 = arith.addf %121, %132 : vector<8x128xf32>
    %c11 = arith.constant 11 : index
    %134 = memref.load %arg1[%c11] : memref<20xf32, #tpu.memory_space<smem>>
    %135 = vector.broadcast %134 : f32 to vector<8x128xf32>
    %136 = arith.mulf %0, %135 : vector<8x128xf32>
    %c11_35 = arith.constant 11 : index
    %137 = memref.load %arg2[%c11_35] : memref<20xf32, #tpu.memory_space<smem>>
    %138 = vector.broadcast %137 : f32 to vector<8x128xf32>
    %139 = arith.addf %136, %138 : vector<8x128xf32>
    %cst_36 = arith.constant 0.000000e+00 : f32
    %140 = vector.broadcast %cst_36 : f32 to vector<8x128xf32>
    %141 = arith.maximumf %139, %140 : vector<8x128xf32>
    %c11_37 = arith.constant 11 : index
    %142 = memref.load %arg3[%c11_37] : memref<20xf32, #tpu.memory_space<smem>>
    %143 = vector.broadcast %142 : f32 to vector<8x128xf32>
    %144 = arith.mulf %141, %143 : vector<8x128xf32>
    %145 = arith.addf %133, %144 : vector<8x128xf32>
    %c12 = arith.constant 12 : index
    %146 = memref.load %arg1[%c12] : memref<20xf32, #tpu.memory_space<smem>>
    %147 = vector.broadcast %146 : f32 to vector<8x128xf32>
    %148 = arith.mulf %0, %147 : vector<8x128xf32>
    %c12_38 = arith.constant 12 : index
    %149 = memref.load %arg2[%c12_38] : memref<20xf32, #tpu.memory_space<smem>>
    %150 = vector.broadcast %149 : f32 to vector<8x128xf32>
    %151 = arith.addf %148, %150 : vector<8x128xf32>
    %cst_39 = arith.constant 0.000000e+00 : f32
    %152 = vector.broadcast %cst_39 : f32 to vector<8x128xf32>
    %153 = arith.maximumf %151, %152 : vector<8x128xf32>
    %c12_40 = arith.constant 12 : index
    %154 = memref.load %arg3[%c12_40] : memref<20xf32, #tpu.memory_space<smem>>
    %155 = vector.broadcast %154 : f32 to vector<8x128xf32>
    %156 = arith.mulf %153, %155 : vector<8x128xf32>
    %157 = arith.addf %145, %156 : vector<8x128xf32>
    %c13 = arith.constant 13 : index
    %158 = memref.load %arg1[%c13] : memref<20xf32, #tpu.memory_space<smem>>
    %159 = vector.broadcast %158 : f32 to vector<8x128xf32>
    %160 = arith.mulf %0, %159 : vector<8x128xf32>
    %c13_41 = arith.constant 13 : index
    %161 = memref.load %arg2[%c13_41] : memref<20xf32, #tpu.memory_space<smem>>
    %162 = vector.broadcast %161 : f32 to vector<8x128xf32>
    %163 = arith.addf %160, %162 : vector<8x128xf32>
    %cst_42 = arith.constant 0.000000e+00 : f32
    %164 = vector.broadcast %cst_42 : f32 to vector<8x128xf32>
    %165 = arith.maximumf %163, %164 : vector<8x128xf32>
    %c13_43 = arith.constant 13 : index
    %166 = memref.load %arg3[%c13_43] : memref<20xf32, #tpu.memory_space<smem>>
    %167 = vector.broadcast %166 : f32 to vector<8x128xf32>
    %168 = arith.mulf %165, %167 : vector<8x128xf32>
    %169 = arith.addf %157, %168 : vector<8x128xf32>
    %c14 = arith.constant 14 : index
    %170 = memref.load %arg1[%c14] : memref<20xf32, #tpu.memory_space<smem>>
    %171 = vector.broadcast %170 : f32 to vector<8x128xf32>
    %172 = arith.mulf %0, %171 : vector<8x128xf32>
    %c14_44 = arith.constant 14 : index
    %173 = memref.load %arg2[%c14_44] : memref<20xf32, #tpu.memory_space<smem>>
    %174 = vector.broadcast %173 : f32 to vector<8x128xf32>
    %175 = arith.addf %172, %174 : vector<8x128xf32>
    %cst_45 = arith.constant 0.000000e+00 : f32
    %176 = vector.broadcast %cst_45 : f32 to vector<8x128xf32>
    %177 = arith.maximumf %175, %176 : vector<8x128xf32>
    %c14_46 = arith.constant 14 : index
    %178 = memref.load %arg3[%c14_46] : memref<20xf32, #tpu.memory_space<smem>>
    %179 = vector.broadcast %178 : f32 to vector<8x128xf32>
    %180 = arith.mulf %177, %179 : vector<8x128xf32>
    %181 = arith.addf %169, %180 : vector<8x128xf32>
    %c15 = arith.constant 15 : index
    %182 = memref.load %arg1[%c15] : memref<20xf32, #tpu.memory_space<smem>>
    %183 = vector.broadcast %182 : f32 to vector<8x128xf32>
    %184 = arith.mulf %0, %183 : vector<8x128xf32>
    %c15_47 = arith.constant 15 : index
    %185 = memref.load %arg2[%c15_47] : memref<20xf32, #tpu.memory_space<smem>>
    %186 = vector.broadcast %185 : f32 to vector<8x128xf32>
    %187 = arith.addf %184, %186 : vector<8x128xf32>
    %cst_48 = arith.constant 0.000000e+00 : f32
    %188 = vector.broadcast %cst_48 : f32 to vector<8x128xf32>
    %189 = arith.maximumf %187, %188 : vector<8x128xf32>
    %c15_49 = arith.constant 15 : index
    %190 = memref.load %arg3[%c15_49] : memref<20xf32, #tpu.memory_space<smem>>
    %191 = vector.broadcast %190 : f32 to vector<8x128xf32>
    %192 = arith.mulf %189, %191 : vector<8x128xf32>
    %193 = arith.addf %181, %192 : vector<8x128xf32>
    %c16 = arith.constant 16 : index
    %194 = memref.load %arg1[%c16] : memref<20xf32, #tpu.memory_space<smem>>
    %195 = vector.broadcast %194 : f32 to vector<8x128xf32>
    %196 = arith.mulf %0, %195 : vector<8x128xf32>
    %c16_50 = arith.constant 16 : index
    %197 = memref.load %arg2[%c16_50] : memref<20xf32, #tpu.memory_space<smem>>
    %198 = vector.broadcast %197 : f32 to vector<8x128xf32>
    %199 = arith.addf %196, %198 : vector<8x128xf32>
    %cst_51 = arith.constant 0.000000e+00 : f32
    %200 = vector.broadcast %cst_51 : f32 to vector<8x128xf32>
    %201 = arith.maximumf %199, %200 : vector<8x128xf32>
    %c16_52 = arith.constant 16 : index
    %202 = memref.load %arg3[%c16_52] : memref<20xf32, #tpu.memory_space<smem>>
    %203 = vector.broadcast %202 : f32 to vector<8x128xf32>
    %204 = arith.mulf %201, %203 : vector<8x128xf32>
    %205 = arith.addf %193, %204 : vector<8x128xf32>
    %c17 = arith.constant 17 : index
    %206 = memref.load %arg1[%c17] : memref<20xf32, #tpu.memory_space<smem>>
    %207 = vector.broadcast %206 : f32 to vector<8x128xf32>
    %208 = arith.mulf %0, %207 : vector<8x128xf32>
    %c17_53 = arith.constant 17 : index
    %209 = memref.load %arg2[%c17_53] : memref<20xf32, #tpu.memory_space<smem>>
    %210 = vector.broadcast %209 : f32 to vector<8x128xf32>
    %211 = arith.addf %208, %210 : vector<8x128xf32>
    %cst_54 = arith.constant 0.000000e+00 : f32
    %212 = vector.broadcast %cst_54 : f32 to vector<8x128xf32>
    %213 = arith.maximumf %211, %212 : vector<8x128xf32>
    %c17_55 = arith.constant 17 : index
    %214 = memref.load %arg3[%c17_55] : memref<20xf32, #tpu.memory_space<smem>>
    %215 = vector.broadcast %214 : f32 to vector<8x128xf32>
    %216 = arith.mulf %213, %215 : vector<8x128xf32>
    %217 = arith.addf %205, %216 : vector<8x128xf32>
    %c18 = arith.constant 18 : index
    %218 = memref.load %arg1[%c18] : memref<20xf32, #tpu.memory_space<smem>>
    %219 = vector.broadcast %218 : f32 to vector<8x128xf32>
    %220 = arith.mulf %0, %219 : vector<8x128xf32>
    %c18_56 = arith.constant 18 : index
    %221 = memref.load %arg2[%c18_56] : memref<20xf32, #tpu.memory_space<smem>>
    %222 = vector.broadcast %221 : f32 to vector<8x128xf32>
    %223 = arith.addf %220, %222 : vector<8x128xf32>
    %cst_57 = arith.constant 0.000000e+00 : f32
    %224 = vector.broadcast %cst_57 : f32 to vector<8x128xf32>
    %225 = arith.maximumf %223, %224 : vector<8x128xf32>
    %c18_58 = arith.constant 18 : index
    %226 = memref.load %arg3[%c18_58] : memref<20xf32, #tpu.memory_space<smem>>
    %227 = vector.broadcast %226 : f32 to vector<8x128xf32>
    %228 = arith.mulf %225, %227 : vector<8x128xf32>
    %229 = arith.addf %217, %228 : vector<8x128xf32>
    %c19 = arith.constant 19 : index
    %230 = memref.load %arg1[%c19] : memref<20xf32, #tpu.memory_space<smem>>
    %231 = vector.broadcast %230 : f32 to vector<8x128xf32>
    %232 = arith.mulf %0, %231 : vector<8x128xf32>
    %c19_59 = arith.constant 19 : index
    %233 = memref.load %arg2[%c19_59] : memref<20xf32, #tpu.memory_space<smem>>
    %234 = vector.broadcast %233 : f32 to vector<8x128xf32>
    %235 = arith.addf %232, %234 : vector<8x128xf32>
    %cst_60 = arith.constant 0.000000e+00 : f32
    %236 = vector.broadcast %cst_60 : f32 to vector<8x128xf32>
    %237 = arith.maximumf %235, %236 : vector<8x128xf32>
    %c19_61 = arith.constant 19 : index
    %238 = memref.load %arg3[%c19_61] : memref<20xf32, #tpu.memory_space<smem>>
    %239 = vector.broadcast %238 : f32 to vector<8x128xf32>
    %240 = arith.mulf %237, %239 : vector<8x128xf32>
    %241 = arith.addf %229, %240 : vector<8x128xf32>
    %c0_62 = arith.constant 0 : index
    %242 = memref.load %arg4[%c0_62] : memref<1xf32, #tpu.memory_space<smem>>
    %243 = vector.broadcast %242 : f32 to vector<8x128xf32>
    %244 = arith.addf %241, %243 : vector<8x128xf32>
    %c0_63 = arith.constant 0 : index
    %c0_64 = arith.constant 0 : index
    %245 = vector.load %arg6[%c0_63, %c0_64] : memref<8x128xf32, #tpu.memory_space<vmem>>, vector<8x128xf32>
    tpu.vector_store %arg6[%c0_63, %c0_64], %244 {strides = array<i32>} : memref<8x128xf32, #tpu.memory_space<vmem>>, vector<8x128xf32>,
    return
  }
  func.func @transform_0(%arg0: i32) -> i32 {
    %c0_i32 = arith.constant 0 : i32
    %c0_i32_0 = arith.constant 0 : i32
    return %c0_i32 : i32
  }
  func.func @transform_1(%arg0: i32) -> i32 {
    %c0_i32 = arith.constant 0 : i32
    %c0_i32_0 = arith.constant 0 : i32
    return %c0_i32 : i32
  }
  func.func @transform_2(%arg0: i32) -> i32 {
    %c0_i32 = arith.constant 0 : i32
    %c0_i32_0 = arith.constant 0 : i32
    return %c0_i32 : i32
  }
  func.func @transform_3(%arg0: i32) -> i32 {
    %c0_i32 = arith.constant 0 : i32
    %c0_i32_0 = arith.constant 0 : i32
    return %c0_i32 : i32
  }
  func.func @transform_4(%arg0: i32) -> (i32, i32) {
    %c0_i32 = arith.constant 0 : i32
    %c0_i32_0 = arith.constant 0 : i32
    return %arg0, %c0_i32 : i32, i32
  }
  func.func @transform_5(%arg0: i32) -> (i32, i32) {
    %c0_i32 = arith.constant 0 : i32
    %c0_i32_0 = arith.constant 0 : i32
    return %arg0, %c0_i32 : i32, i32
  }
}

</mosaic_0001>

<bundles_post_ra>
// kernel: tpu_custom_call.1
= control target key start
LH: loop header
LB: loop body
LE: loop exit
PB: predicated region body
PF: predicated region fallthrough
CT: control target
= control target key end

     0   :  { %11 = vsyncpa [#allocation5], 0  ;;  %s669_s0 = inlined_call_operand.vmem [shape: f32[20], index: 0, kind: input, shape index: {}]   ;;  %s670_s1 = inlined_call_operand.vmem [shape: f32[20], index: 1, kind: input, shape index: {}]   ;;  %s671_s2 = inlined_call_operand.vmem [shape: f32[20], index: 2, kind: input, shape index: {}]   ;;  %s672_s3 = inlined_call_operand.<no memory space> [shape: f32[1], index: 3, kind: input, shape index: {}]   ;;  %s673_s4 = inlined_call_operand.vmem [shape: f32[8,128], index: 4, kind: input, shape index: {}]   ;;  %s674_s5 = inlined_call_operand.hbm [shape: f32[8,128], index: 5, kind: output, shape index: {}]  }
   0x1   :  { %12 = vsyncpa [#allocation7], 0  ;;  %s30_s20 = sshll.u32 %s670_s1, 4  ;;  %s31_s20 = int_to_ptr.vmem [resolvable:$true] %s30_s20 }
   0x2   :  { %13 = vsyncpa [#allocation4], 0  ;;  %s20_s23 = sshll.u32 %s669_s0, 4  ;;  %s360_s24 = scalar_lea.vmem %s31_s20, 16  ;;  %s21_s23 = int_to_ptr.vmem [resolvable:$true] %s20_s23 }
   0x3   :  { %p361_p0 = scmp.ne.s32.totalorder %s31_s20, %s360_s24  ;;  %p365_p1 = scmp.lt.s32.totalorder %s31_s20, %s31_s20 }
   0x4   :  { %p366_p2 = scmp.lt.s32.totalorder %s360_s24, %s360_s24 }
   0x6   :  { %p367_p3 = por %p366_p2, %p365_p1 }
   0x8   :  { %p368_p4 = pnand %p367_p3, %p361_p0 }
   0xa   :  { %371 = shalt.err (!%p368_p4)
}
   0xb   :  { %s424_s25 = smov [#allocation6]   ;;  %s372_s26 = scalar_lea.vmem %s21_s23, 16 }
   0xc   :  { %33 = dma.vmem_to_smem %s31_s20, 16, %s424_s25, [#allocation7]  }
   0xd   :  { %p373_p5 = scmp.ne.s32.totalorder %s21_s23, %s372_s26  ;;  %p377_p6 = scmp.lt.s32.totalorder %s21_s23, %s21_s23 }
   0xe   :  { %p378_p7 = scmp.lt.s32.totalorder %s372_s26, %s372_s26 }
  0x10   :  { %p379_p8 = por %p378_p7, %p377_p6 }
  0x12   :  { %p380_p9 = pnand %p379_p8, %p373_p5 }
  0x14   :  { %383 = shalt.err (!%p380_p9)
}
  0x15   :  { %s425_s1 = smov [#allocation3]   ;;  %s40_s28 = sshll.u32 %s671_s2, 4  ;;  %s41_s28 = int_to_ptr.vmem [resolvable:$true] %s40_s28 }
  0x16   :  { %23 = dma.vmem_to_smem %s21_s23, 16, %s425_s1, [#allocation5]  }
  0x17   :  { %s384_s29 = scalar_lea.vmem %s41_s28, 16  ;;  %p389_p11 = scmp.lt.s32.totalorder %s41_s28, %s41_s28 }
  0x18   :  { %p385_p10 = scmp.ne.s32.totalorder %s41_s28, %s384_s29  ;;  %p390_p12 = scmp.lt.s32.totalorder %s384_s29, %s384_s29 }
  0x1a   :  { %p391_p13 = por %p390_p12, %p389_p11 }
  0x1c   :  { %p392_p0 = pnand %p391_p13, %p385_p10 }
  0x1e   :  { %395 = shalt.err (!%p392_p0)
}
  0x1f   :  { %s426_s30 = smov [#allocation8]  }
  0x20   :  { %43 = dma.vmem_to_smem %s41_s28, 16, %s426_s30, [#allocation7]  }
  0x21   :  { %418 = dma.done.wait [#allocation5], 16  }
  0x22   :  { %419 = vsyncadd [#allocation5], 4294967280 }
  0x23   :  { %420 = dma.done.wait [#allocation7], 32  }
  0x24   :  { %421 = vsyncadd [#allocation7], 4294967264 }
  0x25   :  { %57 = sfence }
  0x26   :  { %s59_s6 = sld [smem:[#allocation3]]  ;;  %s299_s2 = sld [smem:[#allocation3 + $0x1]]  ;;  %v476_v0 = vld [vmem:[%s673_s4] sm:$0xff] }
  0x27   :  { %s62_s7 = sld [smem:[#allocation6]]  ;;  %s300_s9 = sld [smem:[#allocation6 + $0x1]] }
  0x28   :  { %s467_s8 = sld [smem:[#allocation8]]  ;;  %s469_s10 = sld [smem:[#allocation8 + $0x1]] }
  0x29   :  { %s302_s11 = sld [smem:[#allocation3 + $0x2]]  ;;  %s305_s16 = sld [smem:[#allocation3 + $0x3]] }
  0x2a   :  { %s471_s12 = sld [smem:[#allocation6 + $0x2]]  ;;  %s480_s17 = sld [smem:[#allocation6 + $0x3]] }
  0x2b   :  { %s478_s15 = sld [smem:[#allocation8 + $0x2]]  ;;  %s482_s18 = sld [smem:[#allocation8 + $0x3]] }
  0x2c   :  { %v60_v1 = vstv %s59_s6  ;;  %s484_s19 = sld [smem:[#allocation3 + $0x4]]  ;;  %v71_v4 = vstv %s299_s2  ;;  %s491_s21 = sld [smem:[#allocation3 + $0x5]] }
  0x2d   :  { %v63_v2 = vstv %s62_s7  ;;  %s486_s20 = sld [smem:[#allocation6 + $0x4]]  ;;  %v61_v3 = vmul.f32 %v60_v1, %v476_v0  ;;  %v72_v5 = vmul.f32 %v71_v4, %v476_v0  ;;  %v74_v6 = vstv %s300_s9  ;;  %s494_s22 = sld [smem:[#allocation6 + $0x5]] }
  0x2e   :  { %s489_s4 = sld [smem:[#allocation8 + $0x4]]  ;;  %v67_v8 = vstv %s467_s8  ;;  %s498_s23 = sld [smem:[#allocation3 + $0x6]]  ;;  %v78_v12 = vstv %s469_s10 }
  0x2f   :  { %v64_v7 = vadd.f32 %v63_v2, %v61_v3  ;;  %v82_v9 = vstv %s302_s11  ;;  %s500_s24 = sld [smem:[#allocation6 + $0x6]]  ;;  %v75_v11 = vadd.f32 %v74_v6, %v72_v5  ;;  %v93_v14 = vstv %s305_s16  ;;  %s504_s25 = sld [smem:[#allocation8 + $0x5]] }
  0x30   :  { %v85_v10 = vstv %s471_s12  ;;  %v83_v13 = vmul.f32 %v82_v9, %v476_v0  ;;  %s506_s26 = sld [smem:[#allocation3 + $0x7]]  ;;  %v94_v17 = vmul.f32 %v93_v14, %v476_v0  ;;  %v96_v18 = vstv %s480_s17  ;;  %s511_s1 = sld [smem:[#allocation8 + $0x6]] }
  0x31   :  { %v65_v15 = vmax.f32 %v64_v7, 0.0  ;;  %v89_v16 = vstv %s478_s15  ;;  %s513_s0 = sld [smem:[#allocation6 + $0x7]]  ;;  %v76_v19 = vmax.f32 %v75_v11, 0.0  ;;  %s517_s27 = sld [smem:[#allocation3 + $0x8]]  ;;  %v100_v25 = vstv %s482_s18 }
  0x32   :  { %v86_v20 = vadd.f32 %v85_v10, %v83_v13  ;;  %v104_v21 = vstv %s484_s19  ;;  %s519_s28 = sld [smem:[#allocation6 + $0x8]]  ;;  %v97_v24 = vadd.f32 %v96_v18, %v94_v17  ;;  %s523_s29 = sld [smem:[#allocation8 + $0x7]]  ;;  %v115_v29 = vstv %s491_s21 }
  0x33   :  { %v107_v22 = vstv %s486_s20  ;;  %v68_v23 = vmul.f32 %v67_v8, %v65_v15  ;;  %v105_v26 = vmul.f32 %v104_v21, %v476_v0  ;;  %v79_v27 = vmul.f32 %v78_v12, %v76_v19  ;;  %s527_s30 = sld [smem:[#allocation3 + $0x9]]  ;;  %s533_s7 = sld [smem:[#allocation8 + $0x8]] }
  0x34   :  { %v87_v28 = vmax.f32 %v86_v20, 0.0  ;;  %v118_v30 = vstv %s494_s22  ;;  %s529_s6 = sld [smem:[#allocation6 + $0x9]]  ;;  %v98_v31 = vmax.f32 %v97_v24, 0.0  ;;  %v111_v33 = vstv %s489_s4  ;;  %s537_s8 = sld [smem:[#allocation3 + $0xa]] }
  0x35   :  { %v108_v32 = vadd.f32 %v107_v22, %v105_v26  ;;  %v116_v34 = vmul.f32 %v115_v29, %v476_v0  ;;  %v80_v35 = vadd.f32 %v79_v27, %v68_v23  ;;  %v126_v37 = vstv %s498_s23  ;;  %s539_s2 = sld [smem:[#allocation6 + $0xa]]  ;;  %s542_s9 = sld [smem:[#allocation8 + $0x9]] }
  0x36   :  { %v90_v36 = vmul.f32 %v89_v16, %v87_v28  ;;  %v129_v38 = vstv %s500_s24  ;;  %v101_v39 = vmul.f32 %v100_v25, %v98_v31  ;;  %v127_v42 = vmul.f32 %v126_v37, %v476_v0  ;;  %s547_s10 = sld [smem:[#allocation3 + $0xb]]  ;;  %s552_s12 = sld [smem:[#allocation8 + $0xa]] }
  0x37   :  { %v109_v40 = vmax.f32 %v108_v32, 0.0  ;;  %v119_v41 = vadd.f32 %v118_v30, %v116_v34  ;;  %v122_v44 = vstv %s504_s25  ;;  %v137_v45 = vstv %s506_s26  ;;  %s549_s11 = sld [smem:[#allocation6 + $0xb]]  ;;  %s557_s13 = sld [smem:[#allocation3 + $0xc]] }
  0x38   :  { %v91_v43 = vadd.f32 %v90_v36, %v80_v35  ;;  %v140_v46 = vstv %s513_s0  ;;  %v130_v49 = vadd.f32 %v129_v38, %v127_v42  ;;  %v138_v50 = vmul.f32 %v137_v45, %v476_v0  ;;  %s559_s14 = sld [smem:[#allocation6 + $0xc]]  ;;  %s562_s15 = sld [smem:[#allocation8 + $0xb]] }
  0x39   :  { %v112_v47 = vmul.f32 %v111_v33, %v109_v40  ;;  %v120_v48 = vmax.f32 %v119_v41, 0.0  ;;  %v133_v52 = vstv %s511_s1  ;;  %v148_v53 = vstv %s517_s27  ;;  %s567_s16 = sld [smem:[#allocation3 + $0xd]]  ;;  %s572_s18 = sld [smem:[#allocation8 + $0xc]] }
  0x3a   :  { %v102_v51 = vadd.f32 %v101_v39, %v91_v43  ;;  %v151_v54 = vstv %s519_s28  ;;  %v131_v56 = vmax.f32 %v130_v49, 0.0  ;;  %v141_v57 = vadd.f32 %v140_v46, %v138_v50  ;;  %s569_s17 = sld [smem:[#allocation6 + $0xd]]  ;;  %s577_s19 = sld [smem:[#allocation3 + $0xe]] }
  0x3b   :  { %v123_v55 = vmul.f32 %v122_v44, %v120_v48  ;;  %v149_v58 = vmul.f32 %v148_v53, %v476_v0  ;;  %v144_v60 = vstv %s523_s29  ;;  %v159_v61 = vstv %s527_s30  ;;  %s579_s20 = sld [smem:[#allocation6 + $0xe]]  ;;  %s582_s4 = sld [smem:[#allocation8 + $0xd]] }
  0x3c   :  { %v113_v59 = vadd.f32 %v112_v47, %v102_v51  ;;  %v162_v62 = vstv %s529_s6  ;;  %v134_v63 = vmul.f32 %v133_v52, %v131_v56  ;;  %v142_v1 = vmax.f32 %v141_v57, 0.0  ;;  %s587_s21 = sld [smem:[#allocation3 + $0xf]]  ;;  %s592_s23 = sld [smem:[#allocation8 + $0xe]] }
  0x3d   :  { %v152_v2 = vadd.f32 %v151_v54, %v149_v58  ;;  %v160_v3 = vmul.f32 %v159_v61, %v476_v0  ;;  %v155_v5 = vstv %s533_s7  ;;  %v170_v6 = vstv %s537_s8  ;;  %s589_s22 = sld [smem:[#allocation6 + $0xf]]  ;;  %s597_s24 = sld [smem:[#allocation3 + $0x10]] }
  0x3e   :  { %v124_v4 = vadd.f32 %v123_v55, %v113_v59  ;;  %v173_v7 = vstv %s539_s2  ;;  %v145_v8 = vmul.f32 %v144_v60, %v142_v1  ;;  %v171_v11 = vmul.f32 %v170_v6, %v476_v0  ;;  %s599_s25 = sld [smem:[#allocation6 + $0x10]]  ;;  %s602_s26 = sld [smem:[#allocation8 + $0xf]] }
  0x3f   :  { %v153_v9 = vmax.f32 %v152_v2, 0.0  ;;  %v163_v10 = vadd.f32 %v162_v62, %v160_v3  ;;  %v166_v13 = vstv %s542_s9  ;;  %v181_v14 = vstv %s547_s10  ;;  %s607_s1 = sld [smem:[#allocation3 + $0x11]]  ;;  %s612_s27 = sld [smem:[#allocation8 + $0x10]] }
  0x40   :  { %v135_v12 = vadd.f32 %v134_v63, %v124_v4  ;;  %v184_v15 = vstv %s549_s11  ;;  %v174_v18 = vadd.f32 %v173_v7, %v171_v11  ;;  %v182_v19 = vmul.f32 %v181_v14, %v476_v0  ;;  %s609_s0 = sld [smem:[#allocation6 + $0x11]]  ;;  %s617_s28 = sld [smem:[#allocation3 + $0x12]] }
  0x41   :  { %v156_v16 = vmul.f32 %v155_v5, %v153_v9  ;;  %v164_v17 = vmax.f32 %v163_v10, 0.0  ;;  %v177_v21 = vstv %s552_s12  ;;  %v192_v22 = vstv %s557_s13  ;;  %s619_s29 = sld [smem:[#allocation6 + $0x12]]  ;;  %s622_s30 = sld [smem:[#allocation8 + $0x11]] }
  0x42   :  { %v146_v20 = vadd.f32 %v145_v8, %v135_v12  ;;  %v195_v23 = vstv %s559_s14  ;;  %v175_v25 = vmax.f32 %v174_v18, 0.0  ;;  %v185_v26 = vadd.f32 %v184_v15, %v182_v19  ;;  %s627_s6 = sld [smem:[#allocation3 + $0x13]]  ;;  %s635_s8 = sld [smem:[#allocation8 + $0x12]] }
  0x43   :  { %v167_v24 = vmul.f32 %v166_v13, %v164_v17  ;;  %v193_v27 = vmul.f32 %v192_v22, %v476_v0  ;;  %v188_v29 = vstv %s562_s15  ;;  %v203_v30 = vstv %s567_s16  ;;  %s629_s7 = sld [smem:[#allocation6 + $0x13]]  ;;  %s427_s11 = smov [#allocation9]  }
  0x44   :  { %v157_v28 = vadd.f32 %v156_v16, %v146_v20  ;;  %v206_v31 = vstv %s569_s17  ;;  %v178_v32 = vmul.f32 %v177_v21, %v175_v25  ;;  %v186_v33 = vmax.f32 %v185_v26, 0.0  ;;  %s641_s2 = sld [smem:[#allocation8 + $0x13]]  ;;  %s289_s12 = sshll.u32 %s427_s11, 4  ;;  %s290_s12 = int_to_ptr.vmem [resolvable:$true] %s289_s12 }
  0x45   :  { %v196_v34 = vadd.f32 %v195_v23, %v193_v27  ;;  %v204_v35 = vmul.f32 %v203_v30, %v476_v0  ;;  %v199_v37 = vstv %s572_s18  ;;  %v214_v38 = vstv %s577_s19  ;;  %s396_s13 = scalar_lea.vmem %s290_s12, 128  ;;  %p401_p2 = scmp.lt.s32.totalorder %s290_s12, %s290_s12 }
  0x46   :  { %v168_v36 = vadd.f32 %v167_v24, %v157_v28  ;;  %v217_v39 = vstv %s579_s20  ;;  %v189_v40 = vmul.f32 %v188_v29, %v186_v33  ;;  %v215_v43 = vmul.f32 %v214_v38, %v476_v0  ;;  %p397_p1 = scmp.ne.s32.totalorder %s290_s12, %s396_s13  ;;  %p402_p3 = scmp.lt.s32.totalorder %s396_s13, %s396_s13 }
  0x47   :  { %v197_v41 = vmax.f32 %v196_v34, 0.0  ;;  %v207_v42 = vadd.f32 %v206_v31, %v204_v35  ;;  %v210_v45 = vstv %s582_s4  ;;  %v225_v46 = vstv %s587_s21 }
  0x48   :  { %v179_v44 = vadd.f32 %v178_v32, %v168_v36  ;;  %v228_v47 = vstv %s589_s22  ;;  %v218_v50 = vadd.f32 %v217_v39, %v215_v43  ;;  %v226_v51 = vmul.f32 %v225_v46, %v476_v0  ;;  %p403_p4 = por %p402_p3, %p401_p2 }
  0x49   :  { %v200_v48 = vmul.f32 %v199_v37, %v197_v41  ;;  %v208_v49 = vmax.f32 %v207_v42, 0.0  ;;  %v221_v53 = vstv %s592_s23  ;;  %v236_v54 = vstv %s597_s24 }
  0x4a   :  { %v190_v52 = vadd.f32 %v189_v40, %v179_v44  ;;  %v239_v55 = vstv %s599_s25  ;;  %v219_v57 = vmax.f32 %v218_v50, 0.0  ;;  %v229_v58 = vadd.f32 %v228_v47, %v226_v51  ;;  %p404_p5 = pnand %p403_p4, %p397_p1 }
  0x4b   :  { %v211_v56 = vmul.f32 %v210_v45, %v208_v49  ;;  %v237_v59 = vmul.f32 %v236_v54, %v476_v0  ;;  %v232_v61 = vstv %s602_s26  ;;  %v247_v62 = vstv %s607_s1 }
  0x4c   :  { %v201_v60 = vadd.f32 %v200_v48, %v190_v52  ;;  %v250_v63 = vstv %s609_s0  ;;  %v222_v1 = vmul.f32 %v221_v53, %v219_v57  ;;  %v230_v2 = vmax.f32 %v229_v58, 0.0 }
  0x4d   :  { %v240_v3 = vadd.f32 %v239_v55, %v237_v59  ;;  %v248_v4 = vmul.f32 %v247_v62, %v476_v0  ;;  %v243_v6 = vstv %s612_s27  ;;  %v258_v7 = vstv %s617_s28 }
  0x4e   :  { %v212_v5 = vadd.f32 %v211_v56, %v201_v60  ;;  %v261_v8 = vstv %s619_s29  ;;  %v233_v9 = vmul.f32 %v232_v61, %v230_v2  ;;  %v259_v12 = vmul.f32 %v258_v7, %v476_v0 }
  0x4f   :  { %v241_v10 = vmax.f32 %v240_v3, 0.0  ;;  %v251_v11 = vadd.f32 %v250_v63, %v248_v4  ;;  %v254_v14 = vstv %s622_s30  ;;  %v269_v15 = vstv %s627_s6 }
  0x50   :  { %v223_v13 = vadd.f32 %v222_v1, %v212_v5  ;;  %v272_v16 = vstv %s629_s7  ;;  %v262_v19 = vadd.f32 %v261_v8, %v259_v12  ;;  %v270_v20 = vmul.f32 %v269_v15, %v476_v0 }
  0x51   :  { %v244_v17 = vmul.f32 %v243_v6, %v241_v10  ;;  %v252_v18 = vmax.f32 %v251_v11, 0.0  ;;  %v265_v22 = vstv %s635_s8  ;;  %v276_v27 = vstv %s641_s2 }
  0x52   :  { %v234_v21 = vadd.f32 %v233_v9, %v223_v13  ;;  %v263_v24 = vmax.f32 %v262_v19, 0.0  ;;  %v273_v25 = vadd.f32 %v272_v16, %v270_v20  ;;  %v280_v33 = vstv %s672_s3 }
  0x53   :  { %v255_v23 = vmul.f32 %v254_v14, %v252_v18 }
  0x54   :  { %v245_v26 = vadd.f32 %v244_v17, %v234_v21  ;;  %v266_v28 = vmul.f32 %v265_v22, %v263_v24  ;;  %v274_v29 = vmax.f32 %v273_v25, 0.0 }
  0x56   :  { %v256_v30 = vadd.f32 %v255_v23, %v245_v26  ;;  %v277_v31 = vmul.f32 %v276_v27, %v274_v29 }
  0x58   :  { %v267_v32 = vadd.f32 %v266_v28, %v256_v30 }
  0x5a   :  { %v278_v34 = vadd.f32 %v277_v31, %v267_v32 }
  0x5c   :  { %v281_v0 = vadd.f32 %v280_v33, %v278_v34 }
  0x5e   :  { %282 = vst [vmem:[#allocation9] sm:$0xff] %v281_v0 }
  0x5f   :  { %407 = shalt.err (!%p404_p5)
}
  0x60   :  { %s408_s16 = scalar_lea.hbm %s674_s5, 128 }
  0x61   :  { %p409_p6 = scmp.ne.s32.totalorder %s674_s5, %s408_s16  ;;  %p412_p7 = scmp.lt.u32.totalorder %s408_s16, %s674_s5 }
  0x63   :  { %p414_p8 = pnand %p412_p7, %p409_p6 }
  0x65   :  { %417 = shalt.err (!%p414_p8)
}
  0x66   :  { %292 = dma.vmem_to_hbm [thread:$0]  %s290_s12, 128, %s674_s5, [#allocation4]  }
  0x67   :  { %422 = dma.done.wait [#allocation4], 128  }
  0x68   :  { %423 = vsyncadd [#allocation4], 4294967168 }
  0x69   :  { %296 = vsyncpa [#allocation4], 1 }
  0x6a   :  { %297 = vsyncpa [#allocation5], 1 }
  0x6b   :  { %298 = vsyncpa [#allocation7], 1 }

</bundles_post_ra>
